<compile_context>
chip_gen: v5e
topology: v5e:2x2
jax: 0.10.0
libtpu: 0.0.40
codegen_flags: <defaults>
</compile_context>

<pallas_src>
import functools

import jax
import jax.numpy as jnp
from jax import lax
from jax.experimental import pallas as pl
from jax.experimental.pallas import tpu as pltpu

# --- config (mirrors local_running_params) --------------------------------
NUM_FEATURES = 4       # C  (num_features)
WINDOW_SIZE = 16       # L  (window_size)
NUM_STEPS = 4          # activations.common.num_steps
BETA = 0.9             # activations.common.beta
POS_THRESHOLD = 0.5    # activations.ternary.pos_threshold (used when adaptive=False)
NEG_THRESHOLD = -0.5   # activations.ternary.neg_threshold
ADAPTIVE = True        # activations.ternary.adaptive
LN_EPS = 1e-5          # nn.LayerNorm default eps

DEFAULT_ROW_TILE = 4096   # 128-lane rows per block (= 8192 samples at D=64): 2 MiB in + 2 MiB out


def _round_up(n, m):
    return ((n + m - 1) // m) * m


def _cdiv(a, b):
    return -(-a // b)


def ternary_spike_kernel(thr_ref, x_ref, s_ref, w_ref, b_ref, o_ref, *,
                         num_steps, beta, ln_eps, inv_d):
    # x block: (row_tile, 128) -- two samples per 128-lane row (lanes 0..63 / 64..127).
    x = x_ref[...].astype(jnp.float32)
    ones_blk = s_ref[...]                                 # (128, 128) block-diag ones (f32)
    inv_n = jnp.float32(inv_d)

    # Per-sample LayerNorm statistics on the (idle) MXU.  The block-diagonal ones matrix
    # returns each sample's sum already broadcast across that sample's own lanes.
    s1 = jnp.dot(x, ones_blk, preferred_element_type=jnp.float32,
                 precision=jax.lax.Precision.HIGHEST)     # per-sample sum(x)
    s2 = jnp.dot(x * x, ones_blk, preferred_element_type=jnp.float32,
                 precision=jax.lax.Precision.HIGHEST)     # per-sample sum(x*x)
    mean = s1 * inv_n
    var = jnp.maximum(s2 * inv_n - mean * mean, jnp.float32(0.0))  # clamp: single-pass var
    inv_std = lax.rsqrt(var + jnp.float32(ln_eps))        # EUP rsqrt

    # Affine LN params: (1, 128) row = two concatenated copies of the flattened (C, L) params.
    w = w_ref[...].astype(jnp.float32)
    b = b_ref[...].astype(jnp.float32)
    xn = (x - mean) * inv_std * w + b                     # (row_tile, 128)

    pos_thr = thr_ref[0]                                  # adaptive (or fixed) thresholds
    neg_thr = thr_ref[1]
    beta_c = jnp.float32(min(max(beta, 0.0), 1.0))        # beta.clamp(0, 1)
    one = jnp.float32(1.0)
    neg_one = jnp.float32(-1.0)
    zero = jnp.float32(0.0)

    def fire(m):                                          # ternary spike: one nested select
        return jnp.where(m > pos_thr, one, jnp.where(m < neg_thr, neg_one, zero))

    # Step 0 specialized: mem starts at 0 -> reset = 0, mem = xn  (exact, saves VALU ops).
    mem = xn
    acc = fire(mem)
    for _ in range(num_steps - 1):                        # small & static -> unrolled
        reset = jnp.where(mem > one, one, zero)           # H(mem - threshold), threshold = 1
        mem = beta_c * mem + xn - reset                   # 'subtract' reset (threshold == 1)
        acc = acc + fire(mem)                             # graded_spikes_factor = 1.0

    # reduce=True: mean over the stacked step dimension.
    o_ref[...] = (acc * jnp.float32(1.0 / num_steps)).astype(o_ref.dtype)


@functools.partial(jax.jit, static_argnames=(
    "num_steps", "beta", "pos_threshold", "neg_threshold", "adaptive", "row_tile"))
def ternary_spike_activation(x, ln_weight, ln_bias, *,
                             num_steps=NUM_STEPS, beta=BETA,
                             pos_threshold=POS_THRESHOLD,
                             neg_threshold=NEG_THRESHOLD,
                             adaptive=ADAPTIVE,
                             row_tile=DEFAULT_ROW_TILE):
    B, C, L = x.shape
    D = C * L
    assert num_steps >= 1
    # Two-samples-per-row packing requires D to divide the 128-wide lane axis.
    assert 128 % D == 0, "C*L must divide 128 for the packed lane layout"
    pack = 128 // D

    # Adaptive thresholds from the norm parameters (glue, not the hot path).
    w32 = ln_weight.astype(jnp.float32).reshape(D)
    b32 = ln_bias.astype(jnp.float32).reshape(D)
    if adaptive:
        gamma = jnp.mean(jnp.abs(w32))
        bmean = jnp.mean(b32)
        pos, neg = bmean + gamma, bmean - gamma
    else:
        pos, neg = jnp.float32(pos_threshold), jnp.float32(neg_threshold)
    thr = jnp.stack([pos, neg]).astype(jnp.float32)       # -> SMEM scalars

    # Tile selection: multiple of 8 rows, no bigger than needed.
    rows_min = _cdiv(B, pack)
    rt = min(int(row_tile), _round_up(rows_min, 8))
    rt = max(8, _round_up(rt, 8))
    # v7x megacore: if the whole batch would fit one block, halve it so grid >= 2.
    if rows_min <= rt and rows_min >= 16:
        rt = _round_up(_cdiv(rows_min, 2), 8)
    rows_pad = _round_up(rows_min, rt)
    B_pad = rows_pad * pack

    # Free, contiguous packing: (B, C, L) -> (B, D) -> (rows, 128).  No transpose.
    xf = x.reshape(B, D)
    if B_pad != B:
        xf = jnp.pad(xf, ((0, B_pad - B), (0, 0)))        # zero rows; sliced off below
    x_packed = xf.reshape(rows_pad, pack * D)

    # Constant 128x128 block-diagonal ones matrix for per-sample sums on the MXU.
    lane = jnp.arange(128, dtype=jnp.int32)
    ones_blk = (lane[:, None] // D == lane[None, :] // D).astype(jnp.float32)
    # LN params as a single lane-dense row: `pack` concatenated copies of the (C,L) params.
    w_row = jnp.tile(w32, pack).reshape(1, 128)
    b_row = jnp.tile(b32, pack).reshape(1, 128)

    kernel = functools.partial(ternary_spike_kernel, num_steps=int(num_steps),
                               beta=float(beta), ln_eps=LN_EPS, inv_d=1.0 / D)
    out_packed = pl.pallas_call(
        kernel,
        out_shape=jax.ShapeDtypeStruct((rows_pad, 128), x.dtype),
        grid=(rows_pad // rt,),
        in_specs=[
            pl.BlockSpec(memory_space=pltpu.MemorySpace.SMEM),   # thresholds (2,)
            pl.BlockSpec((rt, 128), lambda i: (i, 0)),           # packed activations
            pl.BlockSpec((128, 128), lambda i: (0, 0)),          # block-diag ones (resident)
            pl.BlockSpec((1, 128), lambda i: (0, 0)),            # LayerNorm weight row
            pl.BlockSpec((1, 128), lambda i: (0, 0)),            # LayerNorm bias row
        ],
        out_specs=pl.BlockSpec((rt, 128), lambda i: (i, 0)),
        input_output_aliases={1: 0},                             # x_packed buffer reused as out
        compiler_params=pltpu.CompilerParams(
            dimension_semantics=("parallel",),
            vmem_limit_bytes=48 * 1024 * 1024),
    )(thr, x_packed, ones_blk, w_row, b_row)

    # Free unpacking back to the module's NCL layout.
    return out_packed.reshape(B_pad, D)[:B].reshape(B, C, L)


def ternary_spike_activation_ref(x, ln_weight, ln_bias, *,
                                 num_steps=NUM_STEPS, beta=BETA, adaptive=ADAPTIVE):
    """Pure-JAX reference mirroring the PyTorch forward (ln norm, adaptive, reduce=True)."""
    x = x.astype(jnp.float32)
    w = ln_weight.astype(jnp.float32)
    b = ln_bias.astype(jnp.float32)
    mean = jnp.mean(x, axis=(1, 2), keepdims=True)
    var = jnp.mean((x - mean) ** 2, axis=(1, 2), keepdims=True)
    xn = (x - mean) * lax.rsqrt(var + LN_EPS) * w[None] + b[None]
    if adaptive:
        gamma = jnp.mean(jnp.abs(w))
        bmean = jnp.mean(b)
        pos, neg = bmean + gamma, bmean - gamma
    else:
        pos, neg = POS_THRESHOLD, NEG_THRESHOLD
    beta_c = min(max(beta, 0.0), 1.0)
    mem = jnp.zeros_like(xn)
    acc = jnp.zeros_like(xn)
    for _ in range(num_steps):
        reset = (mem > 1.0).astype(jnp.float32)
        mem = beta_c * mem + xn - reset
        acc = acc + (mem > pos).astype(jnp.float32) - (mem < neg).astype(jnp.float32)
    return acc / num_steps


if __name__ == "__main__":
    key = jax.random.PRNGKey(0)
    kx, kw, kb, kx2 = jax.random.split(key, 4)

    B, C, L = 2, NUM_FEATURES, WINDOW_SIZE
    x = jax.random.normal(kx, (B, C, L), dtype=jnp.float32) * 2.0
    # Deterministic, non-trivial LayerNorm parameters (synthetic init).
    ln_weight = 1.0 + 0.5 * jax.random.normal(kw, (C, L), dtype=jnp.float32)
    ln_bias = 0.1 * jax.random.normal(kb, (C, L), dtype=jnp.float32)

    out = jax.block_until_ready(ternary_spike_activation(x, ln_weight, ln_bias))
    ref = ternary_spike_activation_ref(x, ln_weight, ln_bias)
    assert out.shape == (B, C, L)
    assert jnp.allclose(out, ref, atol=1e-5), "mismatch vs pure-JAX reference (small batch)"

    # Larger batch: default tile exercises the megacore split (grid=2); row_tile=8 exercises
    # the multi-block pipeline (grid=19) plus batch padding.  Both must match the reference.
    B2 = 300
    x2 = jax.random.normal(kx2, (B2, C, L), dtype=jnp.float32) * 2.0
    ref2 = ternary_spike_activation_ref(x2, ln_weight, ln_bias)
    out2_default = jax.block_until_ready(
        ternary_spike_activation(x2, ln_weight, ln_bias))
    out2_small = jax.block_until_ready(
        ternary_spike_activation(x2, ln_weight, ln_bias, row_tile=8))
    assert out2_default.shape == (B2, C, L)
    assert jnp.allclose(out2_default, ref2, atol=1e-5), "mismatch (megacore-split tiling)"
    assert jnp.allclose(out2_small, ref2, atol=1e-5), "mismatch (multi-block tiling)"

    print("KERNEL_OK")
</pallas_src>

<mosaic_0001>
module attributes {stable_mosaic.version = 11 : i64} {
  func.func @ternary_spike_kernel(%arg0: i32, %arg1: memref<2xf32, #tpu.memory_space<smem>>, %arg2: memref<8x128xf32, #tpu.memory_space<vmem>>, %arg3: memref<128x128xf32, #tpu.memory_space<vmem>>, %arg4: memref<1x128xf32, #tpu.memory_space<vmem>>, %arg5: memref<1x128xf32, #tpu.memory_space<vmem>>, %arg6: memref<8x128xf32, #tpu.memory_space<vmem>>) attributes {dimension_semantics = [#tpu.dimension_semantics<parallel>], iteration_bounds = array<i64: 1>, scalar_prefetch = 0 : i64, scratch_operands = 0 : i64, tpu.core_type = #tpu.core_type<tc>, window_params = [{transform_indices = @transform_0, window_bounds = array<i64: 2>}, {transform_indices = @transform_1, window_bounds = array<i64: 8, 128>}, {pipeline_mode = #tpu.pipeline_mode<synchronous>, transform_indices = @transform_2, window_bounds = array<i64: 128, 128>}, {pipeline_mode = #tpu.pipeline_mode<synchronous>, transform_indices = @transform_3, window_bounds = array<i64: 1, 128>}, {pipeline_mode = #tpu.pipeline_mode<synchronous>, transform_indices = @transform_4, window_bounds = array<i64: 1, 128>}, {transform_indices = @transform_5, window_bounds = array<i64: 8, 128>}]} {
    %c0 = arith.constant 0 : index
    %c0_0 = arith.constant 0 : index
    %0 = vector.load %arg2[%c0, %c0_0] : memref<8x128xf32, #tpu.memory_space<vmem>>, vector<8x128xf32>
    %c0_1 = arith.constant 0 : index
    %c0_2 = arith.constant 0 : index
    %1 = vector.load %arg3[%c0_1, %c0_2] : memref<128x128xf32, #tpu.memory_space<vmem>>, vector<128x128xf32>
    %cst = arith.constant dense<0.000000e+00> : vector<8x128xf32>
    %2 = tpu.matmul %0, %1, %cst {dimension_numbers = #tpu.dot_dimension_numbers<[1], [0], [0], [1], [0, 0, 1, 1], [], []>, precision = #tpu.contract_precision<fp32>} : vector<8x128xf32>, vector<128x128xf32>, vector<8x128xf32> -> vector<8x128xf32>
    %3 = arith.mulf %0, %0 : vector<8x128xf32>
    %cst_3 = arith.constant dense<0.000000e+00> : vector<8x128xf32>
    %4 = tpu.matmul %3, %1, %cst_3 {dimension_numbers = #tpu.dot_dimension_numbers<[1], [0], [0], [1], [0, 0, 1, 1], [], []>, precision = #tpu.contract_precision<fp32>} : vector<8x128xf32>, vector<128x128xf32>, vector<8x128xf32> -> vector<8x128xf32>
    %cst_4 = arith.constant 1.562500e-02 : f32
    %5 = vector.broadcast %cst_4 : f32 to vector<8x128xf32>
    %6 = arith.mulf %2, %5 : vector<8x128xf32>
    %cst_5 = arith.constant 1.562500e-02 : f32
    %7 = vector.broadcast %cst_5 : f32 to vector<8x128xf32>
    %8 = arith.mulf %4, %7 : vector<8x128xf32>
    %9 = arith.mulf %6, %6 : vector<8x128xf32>
    %10 = arith.subf %8, %9 : vector<8x128xf32>
    %cst_6 = arith.constant 0.000000e+00 : f32
    %11 = vector.broadcast %cst_6 : f32 to vector<8x128xf32>
    %12 = arith.maximumf %10, %11 : vector<8x128xf32>
    %cst_7 = arith.constant 9.99999974E-6 : f32
    %13 = vector.broadcast %cst_7 : f32 to vector<8x128xf32>
    %14 = arith.addf %12, %13 : vector<8x128xf32>
    %15 = math.rsqrt %14 : vector<8x128xf32>
    %c0_8 = arith.constant 0 : index
    %c0_9 = arith.constant 0 : index
    %16 = vector.load %arg4[%c0_8, %c0_9] : memref<1x128xf32, #tpu.memory_space<vmem>>, vector<1x128xf32>
    %c0_10 = arith.constant 0 : index
    %c0_11 = arith.constant 0 : index
    %17 = vector.load %arg5[%c0_10, %c0_11] : memref<1x128xf32, #tpu.memory_space<vmem>>, vector<1x128xf32>
    %18 = arith.subf %0, %6 : vector<8x128xf32>
    %19 = arith.mulf %18, %15 : vector<8x128xf32>
    %20 = vector.broadcast %16 : vector<1x128xf32> to vector<8x128xf32>
    %21 = arith.mulf %19, %20 : vector<8x128xf32>
    %22 = vector.broadcast %17 : vector<1x128xf32> to vector<8x128xf32>
    %23 = arith.addf %21, %22 : vector<8x128xf32>
    %c0_12 = arith.constant 0 : index
    %24 = memref.load %arg1[%c0_12] : memref<2xf32, #tpu.memory_space<smem>>
    %c1 = arith.constant 1 : index
    %25 = memref.load %arg1[%c1] : memref<2xf32, #tpu.memory_space<smem>>
    %26 = vector.broadcast %24 : f32 to vector<8x128xf32>
    %27 = arith.cmpf ogt, %23, %26 : vector<8x128xf32>
    %28 = vector.broadcast %25 : f32 to vector<8x128xf32>
    %29 = arith.cmpf olt, %23, %28 : vector<8x128xf32>
    %cst_13 = arith.constant -1.000000e+00 : f32
    %cst_14 = arith.constant 0.000000e+00 : f32
    %30 = vector.broadcast %cst_13 : f32 to vector<8x128xf32>
    %31 = vector.broadcast %cst_14 : f32 to vector<8x128xf32>
    %32 = arith.select %29, %30, %31 : vector<8x128xi1>, vector<8x128xf32>
    %cst_15 = arith.constant 1.000000e+00 : f32
    %33 = vector.broadcast %cst_15 : f32 to vector<8x128xf32>
    %34 = arith.select %27, %33, %32 : vector<8x128xi1>, vector<8x128xf32>
    %cst_16 = arith.constant 1.000000e+00 : f32
    %35 = vector.broadcast %cst_16 : f32 to vector<8x128xf32>
    %36 = arith.cmpf ogt, %23, %35 : vector<8x128xf32>
    %cst_17 = arith.constant 1.000000e+00 : f32
    %cst_18 = arith.constant 0.000000e+00 : f32
    %37 = vector.broadcast %cst_17 : f32 to vector<8x128xf32>
    %38 = vector.broadcast %cst_18 : f32 to vector<8x128xf32>
    %39 = arith.select %36, %37, %38 : vector<8x128xi1>, vector<8x128xf32>
    %cst_19 = arith.constant 0.899999976 : f32
    %40 = vector.broadcast %cst_19 : f32 to vector<8x128xf32>
    %41 = arith.mulf %40, %23 : vector<8x128xf32>
    %42 = arith.addf %41, %23 : vector<8x128xf32>
    %43 = arith.subf %42, %39 : vector<8x128xf32>
    %44 = vector.broadcast %24 : f32 to vector<8x128xf32>
    %45 = arith.cmpf ogt, %43, %44 : vector<8x128xf32>
    %46 = vector.broadcast %25 : f32 to vector<8x128xf32>
    %47 = arith.cmpf olt, %43, %46 : vector<8x128xf32>
    %cst_20 = arith.constant -1.000000e+00 : f32
    %cst_21 = arith.constant 0.000000e+00 : f32
    %48 = vector.broadcast %cst_20 : f32 to vector<8x128xf32>
    %49 = vector.broadcast %cst_21 : f32 to vector<8x128xf32>
    %50 = arith.select %47, %48, %49 : vector<8x128xi1>, vector<8x128xf32>
    %cst_22 = arith.constant 1.000000e+00 : f32
    %51 = vector.broadcast %cst_22 : f32 to vector<8x128xf32>
    %52 = arith.select %45, %51, %50 : vector<8x128xi1>, vector<8x128xf32>
    %53 = arith.addf %34, %52 : vector<8x128xf32>
    %cst_23 = arith.constant 1.000000e+00 : f32
    %54 = vector.broadcast %cst_23 : f32 to vector<8x128xf32>
    %55 = arith.cmpf ogt, %43, %54 : vector<8x128xf32>
    %cst_24 = arith.constant 1.000000e+00 : f32
    %cst_25 = arith.constant 0.000000e+00 : f32
    %56 = vector.broadcast %cst_24 : f32 to vector<8x128xf32>
    %57 = vector.broadcast %cst_25 : f32 to vector<8x128xf32>
    %58 = arith.select %55, %56, %57 : vector<8x128xi1>, vector<8x128xf32>
    %cst_26 = arith.constant 0.899999976 : f32
    %59 = vector.broadcast %cst_26 : f32 to vector<8x128xf32>
    %60 = arith.mulf %59, %43 : vector<8x128xf32>
    %61 = arith.addf %60, %23 : vector<8x128xf32>
    %62 = arith.subf %61, %58 : vector<8x128xf32>
    %63 = vector.broadcast %24 : f32 to vector<8x128xf32>
    %64 = arith.cmpf ogt, %62, %63 : vector<8x128xf32>
    %65 = vector.broadcast %25 : f32 to vector<8x128xf32>
    %66 = arith.cmpf olt, %62, %65 : vector<8x128xf32>
    %cst_27 = arith.constant -1.000000e+00 : f32
    %cst_28 = arith.constant 0.000000e+00 : f32
    %67 = vector.broadcast %cst_27 : f32 to vector<8x128xf32>
    %68 = vector.broadcast %cst_28 : f32 to vector<8x128xf32>
    %69 = arith.select %66, %67, %68 : vector<8x128xi1>, vector<8x128xf32>
    %cst_29 = arith.constant 1.000000e+00 : f32
    %70 = vector.broadcast %cst_29 : f32 to vector<8x128xf32>
    %71 = arith.select %64, %70, %69 : vector<8x128xi1>, vector<8x128xf32>
    %72 = arith.addf %53, %71 : vector<8x128xf32>
    %cst_30 = arith.constant 1.000000e+00 : f32
    %73 = vector.broadcast %cst_30 : f32 to vector<8x128xf32>
    %74 = arith.cmpf ogt, %62, %73 : vector<8x128xf32>
    %cst_31 = arith.constant 1.000000e+00 : f32
    %cst_32 = arith.constant 0.000000e+00 : f32
    %75 = vector.broadcast %cst_31 : f32 to vector<8x128xf32>
    %76 = vector.broadcast %cst_32 : f32 to vector<8x128xf32>
    %77 = arith.select %74, %75, %76 : vector<8x128xi1>, vector<8x128xf32>
    %cst_33 = arith.constant 0.899999976 : f32
    %78 = vector.broadcast %cst_33 : f32 to vector<8x128xf32>
    %79 = arith.mulf %78, %62 : vector<8x128xf32>
    %80 = arith.addf %79, %23 : vector<8x128xf32>
    %81 = arith.subf %80, %77 : vector<8x128xf32>
    %82 = vector.broadcast %24 : f32 to vector<8x128xf32>
    %83 = arith.cmpf ogt, %81, %82 : vector<8x128xf32>
    %84 = vector.broadcast %25 : f32 to vector<8x128xf32>
    %85 = arith.cmpf olt, %81, %84 : vector<8x128xf32>
    %cst_34 = arith.constant -1.000000e+00 : f32
    %cst_35 = arith.constant 0.000000e+00 : f32
    %86 = vector.broadcast %cst_34 : f32 to vector<8x128xf32>
    %87 = vector.broadcast %cst_35 : f32 to vector<8x128xf32>
    %88 = arith.select %85, %86, %87 : vector<8x128xi1>, vector<8x128xf32>
    %cst_36 = arith.constant 1.000000e+00 : f32
    %89 = vector.broadcast %cst_36 : f32 to vector<8x128xf32>
    %90 = arith.select %83, %89, %88 : vector<8x128xi1>, vector<8x128xf32>
    %91 = arith.addf %72, %90 : vector<8x128xf32>
    %cst_37 = arith.constant 2.500000e-01 : f32
    %92 = vector.broadcast %cst_37 : f32 to vector<8x128xf32>
    %93 = arith.mulf %91, %92 : vector<8x128xf32>
    %c0_38 = arith.constant 0 : index
    %c0_39 = arith.constant 0 : index
    %94 = vector.load %arg6[%c0_38, %c0_39] : memref<8x128xf32, #tpu.memory_space<vmem>>, vector<8x128xf32>
    tpu.vector_store %arg6[%c0_38, %c0_39], %93 {strides = array<i32>} : memref<8x128xf32, #tpu.memory_space<vmem>>, vector<8x128xf32>,
    return
  }
  func.func @transform_0(%arg0: i32) -> i32 {
    %c0_i32 = arith.constant 0 : i32
    %c0_i32_0 = arith.constant 0 : i32
    return %c0_i32 : i32
  }
  func.func @transform_1(%arg0: i32) -> (i32, i32) {
    %c0_i32 = arith.constant 0 : i32
    %c0_i32_0 = arith.constant 0 : i32
    return %arg0, %c0_i32 : i32, i32
  }
  func.func @transform_2(%arg0: i32) -> (i32, i32) {
    %c0_i32 = arith.constant 0 : i32
    %c0_i32_0 = arith.constant 0 : i32
    %c0_i32_1 = arith.constant 0 : i32
    return %c0_i32, %c0_i32_0 : i32, i32
  }
  func.func @transform_3(%arg0: i32) -> (i32, i32) {
    %c0_i32 = arith.constant 0 : i32
    %c0_i32_0 = arith.constant 0 : i32
    %c0_i32_1 = arith.constant 0 : i32
    return %c0_i32, %c0_i32_0 : i32, i32
  }
  func.func @transform_4(%arg0: i32) -> (i32, i32) {
    %c0_i32 = arith.constant 0 : i32
    %c0_i32_0 = arith.constant 0 : i32
    %c0_i32_1 = arith.constant 0 : i32
    return %c0_i32, %c0_i32_0 : i32, i32
  }
  func.func @transform_5(%arg0: i32) -> (i32, i32) {
    %c0_i32 = arith.constant 0 : i32
    %c0_i32_0 = arith.constant 0 : i32
    return %arg0, %c0_i32 : i32, i32
  }
}

</mosaic_0001>

<bundles_post_ra>
// kernel: tile.9
= control target key start
LH: loop header
LB: loop body
LE: loop exit
PB: predicated region body
PF: predicated region fallthrough
CT: control target
= control target key end

     0   :  { %s37_s8 = smov 16   ;;  %s38_s9 = smov 32   ;;  %vm7_vm0 = vcmask 130048   ;;  %vm13_vm1 = vcmask 523648   ;;  %vm19_vm2 = vcmask 392448   ;;  %vm25_vm3 = vcmask 261248   ;;  %s55_s0 = inlined_call_operand.vmem [shape: f32[4,16], index: 0, kind: input, shape index: {}]   ;;  %s56_s1 = inlined_call_operand.vmem [shape: f32[64], index: 1, kind: output, shape index: {}]  }
   0x1   :  { %v4_v0 = vld [vmem:[%s55_s0] sm:$0xf]  ;;  %s36_s0 = smov 48  }
   0x2   :  { %5 = vst [vmem:[#allocation1] sm:$0xf] %v4_v0 }
   0x9   :  { %v10_v1 = vld [vmem:[#allocation1 + $0x3] sm:$0x1]   ;;  %v22_v2 = vld [vmem:[#allocation1 + $0x1] sm:$0x1]   ;;  %v16_v3 = vld [vmem:[#allocation1 + $0x2] sm:$0x1]  }
   0xa   :  { %11 = vrot.lane.b32.xlu0 %v10_v1, %s36_s0  ;;  %23 = vrot.lane.b32.xlu1 %v22_v2, %s37_s8  ;;  %v6_v4 = vld [vmem:[#allocation1] sm:$0x1]  }
   0xb   :  { %8 = vst.msk [vmem:[#allocation0] sm:$0x1] %vm7_vm0, %v6_v4  }
  0x12   :  { %17 = vrot.lane.b32.xlu0 %v16_v3, %s38_s9 }
  0x7c   :  { %v12_v5 = vpop.permute.xlu0 %11   ;;  %v24_v6 = vpop.permute.xlu1 %23  }
  0x7d   :  { %14 = vst.msk [vmem:[#allocation0] sm:$0x1] %vm13_vm1, %v12_v5  }
  0x84   :  { %v18_v7 = vpop.permute.xlu0 %17  }
  0x85   :  { %20 = vst.msk [vmem:[#allocation0] sm:$0x1] %vm19_vm2, %v18_v7  }
  0x86   :  { %26 = vst.msk [vmem:[#allocation0] sm:$0x1] %vm25_vm3, %v24_v6  }
  0x8d   :  { %v29_v8 = vld [vmem:[#allocation0] sm:$0x1] }
  0x8e   :  { %32 = vst [vmem:[%s56_s1] sm:$0x1] %v29_v8 }

// kernel: tile.11
= control target key start
LH: loop header
LB: loop body
LE: loop exit
PB: predicated region body
PF: predicated region fallthrough
CT: control target
= control target key end

     0   :  { %vm7_vm0 = vcmask 523264   ;;  %vm13_vm1 = vcmask 1048064   ;;  %s39_s0 = inlined_call_operand.vmem [shape: f32[2,64], index: 0, kind: input, shape index: {}]   ;;  %s40_s1 = inlined_call_operand.vmem [shape: f32[1,128], index: 1, kind: output, shape index: {}]  }
   0x1   :  { %v4_v0 = vld [vmem:[%s39_s0] sm:$0x3]  ;;  %s22_s0 = smov 64  }
   0x2   :  { %5 = vst [vmem:[#allocation1] sm:$0x3] %v4_v0 }
   0x9   :  { %v10_v1 = vld [vmem:[#allocation1 + $0x1] sm:$0x1]   ;;  %v6_v2 = vld [vmem:[#allocation1] sm:$0x1]  }
   0xa   :  { %11 = vrot.lane.b32.xlu0 %v10_v1, %s22_s0  ;;  %8 = vst.msk [vmem:[#allocation0] sm:$0x1] %vm7_vm0, %v6_v2  }
  0x7c   :  { %v12_v3 = vpop.permute.xlu0 %11  }
  0x7d   :  { %14 = vst.msk [vmem:[#allocation0] sm:$0x1] %vm13_vm1, %v12_v3  }
  0x84   :  { %v17_v4 = vld [vmem:[#allocation0] sm:$0x1] }
  0x85   :  { %20 = vst [vmem:[%s40_s1] sm:$0x1] %v17_v4 }

// kernel: tile.10
= control target key start
LH: loop header
LB: loop body
LE: loop exit
PB: predicated region body
PF: predicated region fallthrough
CT: control target
= control target key end

     0   :  { %s22_s0 = inlined_call_operand.vmem [shape: f32[64], index: 0, kind: input, shape index: {}]   ;;  %s23_s1 = inlined_call_operand.vmem [shape: f32[2,64], index: 1, kind: output, shape index: {}]  }
   0x1   :  { %v4_v0 = vld [vmem:[%s22_s0] ss:$0 sm:$0xff] }
   0x2   :  { %5 = vst [vmem:[%s23_s1] sm:$0x3] %v4_v0 }

// kernel: ternary_spike_activation.1
= control target key start
LH: loop header
LB: loop body
LE: loop exit
PB: predicated region body
PF: predicated region fallthrough
CT: control target
= control target key end

     0   :  { %10 = vsyncpa [#allocation3], 0  ;;  %s827_s21 = smov [#allocation2]   ;;  %s1325_s0 = inlined_call_operand.vmem [shape: f32[2], index: 0, kind: input, shape index: {}]   ;;  %s1326_s1 = inlined_call_operand.vmem [shape: f32[8,128], index: 1, kind: input, shape index: {}, may-alias: {1,5}]   ;;  %s1327_s2 = inlined_call_operand.vmem [shape: f32[128,128], index: 2, kind: input, shape index: {}]   ;;  %s1328_s3 = inlined_call_operand.vmem [shape: f32[1,128], index: 3, kind: input, shape index: {}]   ;;  %s1329_s4 = inlined_call_operand.vmem [shape: f32[1,128], index: 4, kind: input, shape index: {}]   ;;  %s1330_s5 = inlined_call_operand.vmem [shape: f32[8,128], index: 5, kind: output, shape index: {}, may-alias: {1,5}]  }
   0x1   :  { %s16_s20 = sshll.u32 %s1325_s0, 4  ;;  %s17_s20 = int_to_ptr.vmem [resolvable:$true] %s16_s20 }
   0x2   :  { %19 = dma.vmem_to_smem %s17_s20, 16, %s827_s21, [#allocation3]  }
   0x3   :  { %825 = dma.done.wait [#allocation3], 16  }
   0x4   :  { %826 = vsyncadd [#allocation3], 4294967280 }
   0x5   :  { %32 = sfence }
   0x6   :  { %v49_v0 = vld [vmem:[%s1327_s2 + $0x78] sm:$0xff]  ;;  %v48_v1 = vld [vmem:[%s1327_s2 + $0x70] sm:$0xff]  ;;  %v47_v2 = vld [vmem:[%s1327_s2 + $0x68] sm:$0xff]  ;;  %s806_s6 = sld [smem:[#allocation2 + $0x1]] }
   0x7   :  { %v871_v3 = vand.u32 4294901760, %v49_v0  ;;  %v873_v4 = vand.u32 4294901760, %v48_v1  ;;  %v875_v5 = vand.u32 4294901760, %v47_v2  ;;  %v46_v6 = vld [vmem:[%s1327_s2 + $0x60] sm:$0xff]  ;;  %v45_v7 = vld [vmem:[%s1327_s2 + $0x58] sm:$0xff]  ;;  %v44_v8 = vld [vmem:[%s1327_s2 + $0x50] sm:$0xff] }
   0x8   :  { %v886_v9 = vand.u32 4294901760, %v46_v6  ;;  %v888_v10 = vand.u32 4294901760, %v45_v7  ;;  %v890_v11 = vand.u32 4294901760, %v44_v8  ;;  %v43_v12 = vld [vmem:[%s1327_s2 + $0x48] sm:$0xff]  ;;  %v42_v13 = vld [vmem:[%s1327_s2 + $0x40] sm:$0xff]  ;;  %v41_v21 = vld [vmem:[%s1327_s2 + $0x38] sm:$0xff] }
   0x9   :  { %51 = vmatpush.msra.mxu0 %v871_v3  ;;  %v900_v14 = vsub.f32 %v49_v0, %v871_v3  ;;  %v903_v15 = vsub.f32 %v48_v1, %v873_v4  ;;  %247 = vmatpush.msra.mxu3 %v871_v3  ;;  %v907_v16 = vsub.f32 %v47_v2, %v875_v5  ;;  %v909_v17 = vand.u32 4294901760, %v43_v12  ;;  %v40_v34 = vld [vmem:[%s1327_s2 + $0x30] sm:$0xff]  ;;  %v39_v35 = vld [vmem:[%s1327_s2 + $0x28] sm:$0xff]  ;;  %v38_v42 = vld [vmem:[%s1327_s2 + $0x20] sm:$0xff]  ;;  %s761_s7 = sld [smem:[#allocation2]] }
   0xa   :  { %v912_v18 = vsub.f32 %v46_v6, %v886_v9  ;;  %v915_v19 = vsub.f32 %v45_v7, %v888_v10  ;;  %v918_v20 = vsub.f32 %v44_v8, %v890_v11  ;;  %v934_v25 = vand.u32 4294901760, %v42_v13  ;;  %v37_v48 = vld [vmem:[%s1327_s2 + $0x18] sm:$0xff]  ;;  %v36_v54 = vld [vmem:[%s1327_s2 + $0x10] sm:$0xff]  ;;  %v35_v60 = vld [vmem:[%s1327_s2 + $0x8] sm:$0xff] }
   0xb   :  { %194 = vmatpush.msra.mxu2 %v900_v14  ;;  %53 = vmatpush.msra.mxu0 %v873_v4  ;;  %v926_v22 = vand.u32 4294901760, %v900_v14  ;;  %v929_v23 = vand.u32 4294901760, %v903_v15  ;;  %v932_v24 = vand.u32 4294901760, %v907_v16  ;;  %v944_v28 = vsub.f32 %v43_v12, %v909_v17  ;;  %v34_v1 = vld [vmem:[%s1327_s2] sm:$0xff] }
   0xc   :  { %249 = vmatpush.msra.mxu3 %v873_v4  ;;  %v938_v26 = vand.u32 4294901760, %v912_v18  ;;  %v941_v27 = vand.u32 4294901760, %v915_v19  ;;  %v954_v32 = vand.u32 4294901760, %v41_v21  ;;  %v958_v33 = vand.u32 4294901760, %v918_v20 }
   0xd   :  { %197 = vmatpush.msra.mxu2 %v903_v15  ;;  %55 = vmatpush.msra.mxu0 %v875_v5  ;;  %v94_v29 = vsub.f32 %v900_v14, %v926_v22  ;;  %v100_v30 = vsub.f32 %v903_v15, %v929_v23  ;;  %v106_v31 = vsub.f32 %v907_v16, %v932_v24  ;;  %v981_v41 = vand.u32 4294901760, %v944_v28 }
   0xe   :  { %251 = vmatpush.msra.mxu3 %v875_v5  ;;  %v112_v38 = vsub.f32 %v912_v18, %v938_v26  ;;  %v975_v39 = vsub.f32 %v42_v13, %v934_v25  ;;  %v118_v40 = vsub.f32 %v915_v19, %v941_v27  ;;  %v991_v44 = vsub.f32 %v41_v21, %v954_v32 }
   0xf   :  { %v966_v36 = vand.u32 4294901760, %v94_v29  ;;  %200 = vmatpush.msra.mxu2 %v907_v16  ;;  %57 = vmatpush.msra.mxu0 %v886_v9  ;;  %v970_v37 = vand.u32 4294901760, %v100_v30  ;;  %v988_v43 = vand.u32 4294901760, %v106_v31  ;;  %v993_v45 = vand.u32 4294901760, %v40_v34 }
  0x10   :  { %253 = vmatpush.msra.mxu3 %v886_v9  ;;  %v995_v46 = vand.u32 4294901760, %v39_v35  ;;  %v124_v47 = vsub.f32 %v918_v20, %v958_v33  ;;  %v1006_v49 = vand.u32 4294901760, %v112_v38  ;;  %v1009_v50 = vand.u32 4294901760, %v975_v39 }
  0x11   :  { %96 = vmatpush.msra.mxu1 %v966_v36  ;;  %203 = vmatpush.msra.mxu2 %v912_v18  ;;  %v1012_v51 = vsub.f32 %v40_v34, %v993_v45  ;;  %v1014_v52 = vand.u32 4294901760, %v38_v42  ;;  %v130_v53 = vsub.f32 %v944_v28, %v981_v41  ;;  %v1025_v55 = vand.u32 4294901760, %v118_v40 }
  0x12   :  { %59 = vmatpush.msra.mxu0 %v888_v10  ;;  %255 = vmatpush.msra.mxu3 %v888_v10  ;;  %v1028_v56 = vand.u32 4294901760, %v991_v44  ;;  %v1031_v57 = vsub.f32 %v39_v35, %v995_v46  ;;  %v1033_v58 = vand.u32 4294901760, %v37_v48  ;;  %v1036_v59 = vand.u32 4294901760, %v124_v47 }
  0x13   :  { %102 = vmatpush.msra.mxu1 %v970_v37  ;;  %206 = vmatpush.msra.mxu2 %v915_v19  ;;  %v136_v61 = vsub.f32 %v975_v39, %v1009_v50  ;;  %v1047_v62 = vand.u32 4294901760, %v1012_v51  ;;  %v1050_v63 = vsub.f32 %v38_v42, %v1014_v52  ;;  %v1052_v0 = vand.u32 4294901760, %v36_v54 }
  0x14   :  { %61 = vmatpush.msra.mxu0 %v890_v11  ;;  %257 = vmatpush.msra.mxu3 %v890_v11  ;;  %v1058_v2 = vand.u32 4294901760, %v130_v53  ;;  %v142_v6 = vsub.f32 %v991_v44, %v1028_v56  ;;  %v1066_v7 = vand.u32 4294901760, %v1031_v57  ;;  %v1069_v8 = vsub.f32 %v37_v48, %v1033_v58 }
  0x15   :  { %108 = vmatpush.msra.mxu1 %v988_v43  ;;  %209 = vmatpush.msra.mxu2 %v918_v20  ;;  %1333 = vst [vmem:[#allocation5_spill] sm:$0xff] %v1050_v63  ;;  %v1071_v12 = vand.u32 4294901760, %v35_v60  ;;  %v1075_v13 = vand.u32 4294901760, %v34_v1  ;;  %v1079_v21 = vand.u32 4294901760, %v136_v61  ;;  %v148_v29 = vsub.f32 %v1012_v51, %v1047_v62 }
  0x16   :  { %63 = vmatpush.msra.mxu0 %v909_v17  ;;  %259 = vmatpush.msra.mxu3 %v909_v17  ;;  %1334 = vst [vmem:[#allocation6_spill] sm:$0xff] %v1069_v8  ;;  %v1084_v30 = vand.u32 4294901760, %v1050_v63  ;;  %v1087_v31 = vsub.f32 %v36_v54, %v1052_v0  ;;  %v1093_v34 = vand.u32 4294901760, %v142_v6  ;;  %v154_v35 = vsub.f32 %v1031_v57, %v1066_v7 }
  0x17   :  { %114 = vmatpush.msra.mxu1 %v1006_v49  ;;  %212 = vmatpush.msra.mxu2 %v944_v28  ;;  %v1098_v38 = vand.u32 4294901760, %v1069_v8  ;;  %v1101_v40 = vsub.f32 %v35_v60, %v1071_v12  ;;  %v1107_v42 = vand.u32 4294901760, %v148_v29  ;;  %v1115_v53 = vsub.f32 %v34_v1, %v1075_v13 }
  0x18   :  { %65 = vmatpush.msra.mxu0 %v934_v25  ;;  %261 = vmatpush.msra.mxu3 %v934_v25  ;;  %v160_v47 = vsub.f32 %v1050_v63, %v1084_v30  ;;  %v1112_v48 = vand.u32 4294901760, %v1087_v31  ;;  %v1121_v54 = vand.u32 4294901760, %v154_v35 }
  0x19   :  { %120 = vmatpush.msra.mxu1 %v1025_v55  ;;  %215 = vmatpush.msra.mxu2 %v975_v39  ;;  %v166_v60 = vsub.f32 %v1069_v8, %v1098_v38  ;;  %v1126_v61 = vand.u32 4294901760, %v1101_v40  ;;  %v1137_v29 = vand.u32 4294901760, %v1115_v53 }
  0x1a   :  { %67 = vmatpush.msra.mxu0 %v954_v32  ;;  %263 = vmatpush.msra.mxu3 %v954_v32  ;;  %v1132_v1 = vand.u32 4294901760, %v160_v47  ;;  %v172_v6 = vsub.f32 %v1087_v31, %v1112_v48 }
  0x1b   :  { %126 = vmatpush.msra.mxu1 %v1036_v59  ;;  %218 = vmatpush.msra.mxu2 %v991_v44  ;;  %v1143_v35 = vand.u32 4294901760, %v166_v60  ;;  %v178_v47 = vsub.f32 %v1101_v40, %v1126_v61 }
  0x1c   :  { %69 = vmatpush.msra.mxu0 %v993_v45  ;;  %265 = vmatpush.msra.mxu3 %v993_v45 }
  0x1d   :  { %132 = vmatpush.msra.mxu1 %v1058_v2  ;;  %221 = vmatpush.msra.mxu2 %v1012_v51  ;;  %v1159_v60 = vand.u32 4294901760, %v178_v47  ;;  %v765_v47 = vstv %s806_s6 }
  0x1e   :  { %71 = vmatpush.msra.mxu0 %v995_v46  ;;  %267 = vmatpush.msra.mxu3 %v995_v46 }
  0x1f   :  { %138 = vmatpush.msra.mxu1 %v1079_v21  ;;  %224 = vmatpush.msra.mxu2 %v1031_v57 }
  0x20   :  { %73 = vmatpush.msra.mxu0 %v1014_v52  ;;  %269 = vmatpush.msra.mxu3 %v1014_v52 }
  0x21   :  { %144 = vmatpush.msra.mxu1 %v1093_v34  ;;  %227 = vmatpush.msra.mxu2 %v1050_v63  ;;  %v184_v63 = vsub.f32 %v1115_v53, %v1137_v29 }
  0x22   :  { %75 = vmatpush.msra.mxu0 %v1033_v58  ;;  %271 = vmatpush.msra.mxu3 %v1033_v58 }
  0x23   :  { %150 = vmatpush.msra.mxu1 %v1107_v42  ;;  %230 = vmatpush.msra.mxu2 %v1069_v8  ;;  %v1151_v8 = vand.u32 4294901760, %v172_v6  ;;  %v1165_v6 = vand.u32 4294901760, %v184_v63 }
  0x24   :  { %77 = vmatpush.msra.mxu0 %v1052_v0  ;;  %273 = vmatpush.msra.mxu3 %v1052_v0 }
  0x25   :  { %156 = vmatpush.msra.mxu1 %v1121_v54  ;;  %233 = vmatpush.msra.mxu2 %v1087_v31 }
  0x26   :  { %79 = vmatpush.msra.mxu0 %v1071_v12  ;;  %275 = vmatpush.msra.mxu3 %v1071_v12 }
  0x27   :  { %162 = vmatpush.msra.mxu1 %v1132_v1  ;;  %236 = vmatpush.msra.mxu2 %v1101_v40 }
  0x28   :  { %81 = vmatpush.msra.mxu0 %v1075_v13  ;;  %277 = vmatpush.msra.mxu3 %v1075_v13 }
  0x29   :  { %168 = vmatpush.msra.mxu1 %v1143_v35  ;;  %239 = vmatpush.msra.mxu2 %v1115_v53 }
  0x2a   :  { %288 = vmatpush.msrb.mxu0 %v926_v22  ;;  %438 = vmatpush.msrb.mxu3 %v966_v36  ;;  %v1186_v36 = vld [vmem:[%s1326_s1] sm:$0xff] }
  0x2b   :  { %393 = vmatpush.msrb.mxu2 %v871_v3  ;;  %174 = vmatpush.msra.mxu1 %v1151_v8  ;;  %v391_v63 = vmul.f32 %v1186_v36, %v1186_v36 }
  0x2c   :  { %292 = vmatpush.msrb.mxu0 %v929_v23  ;;  %444 = vmatpush.msrb.mxu3 %v970_v37  ;;  %v1195_v37 = vand.u32 4294901760, %v1186_v36 }
  0x2d   :  { %395 = vmatpush.msrb.mxu2 %v873_v4  ;;  %180 = vmatpush.msra.mxu1 %v1159_v60 }
  0x2e   :  { %296 = vmatpush.msrb.mxu0 %v932_v24  ;;  %450 = vmatpush.msrb.mxu3 %v988_v43  ;;  %v83_v43 = vsub.f32 %v1186_v36, %v1195_v37 }
  0x2f   :  { %397 = vmatpush.msrb.mxu2 %v875_v5  ;;  %186 = vmatpush.msra.mxu1 %v1165_v6 }
  0x30   :  { %300 = vmatpush.msrb.mxu0 %v938_v26  ;;  %456 = vmatpush.msrb.mxu3 %v1006_v49  ;;  %v84_v49 = vand.u32 4294901760, %v83_v43 }
  0x31   :  { %355 = vmatpush.msrb.mxu1 %v871_v3  ;;  %399 = vmatpush.msrb.mxu2 %v886_v9 }
  0x32   :  { %304 = vmatpush.msrb.mxu0 %v941_v27  ;;  %462 = vmatpush.msrb.mxu3 %v1025_v55  ;;  %v85_v55 = vsub.f32 %v83_v43, %v84_v49 }
  0x33   :  { %357 = vmatpush.msrb.mxu1 %v873_v4  ;;  %401 = vmatpush.msrb.mxu2 %v888_v10 }
  0x34   :  { %308 = vmatpush.msrb.mxu0 %v958_v33  ;;  %468 = vmatpush.msrb.mxu3 %v1036_v59  ;;  %v86_v59 = vand.u32 4294901760, %v85_v55 }
  0x35   :  { %359 = vmatpush.msrb.mxu1 %v875_v5  ;;  %403 = vmatpush.msrb.mxu2 %v890_v11 }
  0x36   :  { %312 = vmatpush.msrb.mxu0 %v981_v41  ;;  %474 = vmatpush.msrb.mxu3 %v1058_v2 }
  0x37   :  { %361 = vmatpush.msrb.mxu1 %v886_v9  ;;  %405 = vmatpush.msrb.mxu2 %v909_v17 }
  0x38   :  { %316 = vmatpush.msrb.mxu0 %v1009_v50  ;;  %480 = vmatpush.msrb.mxu3 %v1079_v21 }
  0x39   :  { %363 = vmatpush.msrb.mxu1 %v888_v10  ;;  %407 = vmatpush.msrb.mxu2 %v934_v25 }
  0x3a   :  { %320 = vmatpush.msrb.mxu0 %v1028_v56  ;;  %486 = vmatpush.msrb.mxu3 %v1093_v34 }
  0x3b   :  { %365 = vmatpush.msrb.mxu1 %v890_v11  ;;  %409 = vmatpush.msrb.mxu2 %v954_v32 }
  0x3c   :  { %324 = vmatpush.msrb.mxu0 %v1047_v62  ;;  %492 = vmatpush.msrb.mxu3 %v1107_v42 }
  0x3d   :  { %367 = vmatpush.msrb.mxu1 %v909_v17  ;;  %411 = vmatpush.msrb.mxu2 %v993_v45 }
  0x3e   :  { %328 = vmatpush.msrb.mxu0 %v1066_v7  ;;  %498 = vmatpush.msrb.mxu3 %v1121_v54 }
  0x3f   :  { %369 = vmatpush.msrb.mxu1 %v934_v25  ;;  %413 = vmatpush.msrb.mxu2 %v995_v46 }
  0x40   :  { %332 = vmatpush.msrb.mxu0 %v1084_v30  ;;  %504 = vmatpush.msrb.mxu3 %v1132_v1 }
  0x41   :  { %371 = vmatpush.msrb.mxu1 %v954_v32  ;;  %415 = vmatpush.msrb.mxu2 %v1014_v52 }
  0x42   :  { %336 = vmatpush.msrb.mxu0 %v1098_v38  ;;  %510 = vmatpush.msrb.mxu3 %v1143_v35 }
  0x43   :  { %373 = vmatpush.msrb.mxu1 %v993_v45  ;;  %417 = vmatpush.msrb.mxu2 %v1033_v58 }
  0x44   :  { %340 = vmatpush.msrb.mxu0 %v1112_v48  ;;  %516 = vmatpush.msrb.mxu3 %v1151_v8 }
  0x45   :  { %375 = vmatpush.msrb.mxu1 %v995_v46  ;;  %419 = vmatpush.msrb.mxu2 %v1052_v0 }
  0x46   :  { %344 = vmatpush.msrb.mxu0 %v1126_v61  ;;  %522 = vmatpush.msrb.mxu3 %v1159_v60 }
  0x47   :  { %377 = vmatpush.msrb.mxu1 %v1014_v52  ;;  %421 = vmatpush.msrb.mxu2 %v1071_v12 }
  0x48   :  { %242 = vmatmul.f32.vlgmr.msra.gmra.mxu2 %v83_v43  ;;  %348 = vmatpush.msrb.mxu0 %v1137_v29 }
  0x49   :  { %379 = vmatpush.msrb.mxu1 %v1033_v58  ;;  %423 = vmatpush.msrb.mxu2 %v1075_v13 }
  0x4a   :  { %87 = vmatmul.f32.vlgmr.msra.gmra.mxu0 %v86_v59  ;;  %281 = vmatmul.f32.vlgmr.msra.gmra.mxu3 %v84_v49 }
  0x4b   :  { %381 = vmatpush.msrb.mxu1 %v1052_v0  ;;  %536 = vmatpush.msra.mxu0 %v900_v14  ;;  %v1252_v14 = vand.u32 4294901760, %v391_v63 }
  0x4c   :  { %630 = vmatpush.msra.mxu2 %v926_v22  ;;  %528 = vmatpush.msrb.mxu3 %v1165_v6 }
  0x4d   :  { %383 = vmatpush.msrb.mxu1 %v1071_v12  ;;  %539 = vmatpush.msra.mxu0 %v903_v15 }
  0x4e   :  { %188 = vmatmul.f32.vlgmr.msra.gmra.mxu1 %v1195_v37  ;;  %634 = vmatpush.msra.mxu2 %v929_v23 }
  0x4f   :  { %697 = vmatpush.msra.mxu3 %v871_v3  ;;  %385 = vmatpush.msrb.mxu1 %v1075_v13 }
  0x50   :  { %542 = vmatpush.msra.mxu0 %v907_v16  ;;  %638 = vmatpush.msra.mxu2 %v932_v24 }
  0x51   :  { %589 = vmatpush.msra.mxu1 %v871_v3  ;;  %699 = vmatpush.msra.mxu3 %v873_v4  ;;  %v425_v3 = vsub.f32 %v391_v63, %v1252_v14 }
  0x52   :  { %545 = vmatpush.msra.mxu0 %v912_v18  ;;  %642 = vmatpush.msra.mxu2 %v938_v26 }
  0x53   :  { %591 = vmatpush.msra.mxu1 %v873_v4  ;;  %701 = vmatpush.msra.mxu3 %v875_v5  ;;  %v426_v4 = vand.u32 4294901760, %v425_v3 }
  0x54   :  { %350 = vmatmul.f32.vlgmr.msrb.gmra.mxu0 %v1195_v37  ;;  %646 = vmatpush.msra.mxu2 %v941_v27 }
  0x55   :  { %593 = vmatpush.msra.mxu1 %v875_v5  ;;  %548 = vmatpush.msra.mxu0 %v915_v19  ;;  %v427_v5 = vsub.f32 %v425_v3, %v426_v4 }
  0x56   :  { %703 = vmatpush.msra.mxu3 %v886_v9  ;;  %387 = vmatmul.f32.vlgmr.msrb.gmra.mxu1 %v1195_v37 }
  0x57   :  { %551 = vmatpush.msra.mxu0 %v918_v20  ;;  %595 = vmatpush.msra.mxu1 %v886_v9  ;;  %v428_v9 = vand.u32 4294901760, %v427_v5 }
  0x58   :  { %650 = vmatpush.msra.mxu2 %v958_v33  ;;  %705 = vmatpush.msra.mxu3 %v888_v10 }
  0x59   :  { %554 = vmatpush.msra.mxu0 %v944_v28  ;;  %597 = vmatpush.msra.mxu1 %v888_v10  ;;  %v1335_v10 = vld [vmem:[#allocation5_spill] sm:$0xff] }
  0x5a   :  { %654 = vmatpush.msra.mxu2 %v981_v41  ;;  %707 = vmatpush.msra.mxu3 %v890_v11 }
  0x5b   :  { %557 = vmatpush.msra.mxu0 %v975_v39  ;;  %599 = vmatpush.msra.mxu1 %v890_v11  ;;  %v1336_v11 = vld [vmem:[#allocation6_spill] sm:$0xff] }
  0x5c   :  { %658 = vmatpush.msra.mxu2 %v1009_v50  ;;  %709 = vmatpush.msra.mxu3 %v909_v17 }
  0x5d   :  { %560 = vmatpush.msra.mxu0 %v991_v44  ;;  %601 = vmatpush.msra.mxu1 %v909_v17 }
  0x5e   :  { %662 = vmatpush.msra.mxu2 %v1028_v56  ;;  %711 = vmatpush.msra.mxu3 %v934_v25 }
  0x5f   :  { %563 = vmatpush.msra.mxu0 %v1012_v51  ;;  %603 = vmatpush.msra.mxu1 %v934_v25 }
  0x60   :  { %666 = vmatpush.msra.mxu2 %v1047_v62  ;;  %713 = vmatpush.msra.mxu3 %v954_v32 }
  0x61   :  { %566 = vmatpush.msra.mxu0 %v1031_v57  ;;  %605 = vmatpush.msra.mxu1 %v954_v32 }
  0x62   :  { %670 = vmatpush.msra.mxu2 %v1066_v7  ;;  %715 = vmatpush.msra.mxu3 %v993_v45 }
  0x63   :  { %569 = vmatpush.msra.mxu0 %v1335_v10  ;;  %607 = vmatpush.msra.mxu1 %v993_v45 }
  0x64   :  { %674 = vmatpush.msra.mxu2 %v1084_v30  ;;  %717 = vmatpush.msra.mxu3 %v995_v46 }
  0x65   :  { %429 = vmatmul.f32.vlgmr.msrb.gmra.mxu2 %v428_v9  ;;  %530 = vmatmul.f32.vlgmr.msrb.gmra.mxu3 %v1252_v14 }
  0x66   :  { %572 = vmatpush.msra.mxu0 %v1336_v11  ;;  %609 = vmatpush.msra.mxu1 %v995_v46 }
  0x67   :  { %678 = vmatpush.msra.mxu2 %v1098_v38  ;;  %719 = vmatpush.msra.mxu3 %v1014_v52 }
  0x68   :  { %575 = vmatpush.msra.mxu0 %v1087_v31  ;;  %611 = vmatpush.msra.mxu1 %v1014_v52  ;;  %v809_v31 = vld [vmem:[%s1328_s3] ss:$0 sm:$0xff] }
  0x69   :  { %682 = vmatpush.msra.mxu2 %v1112_v48  ;;  %721 = vmatpush.msra.mxu3 %v1033_v58 }
  0x6a   :  { %578 = vmatpush.msra.mxu0 %v1101_v40  ;;  %613 = vmatpush.msra.mxu1 %v1033_v58  ;;  %v810_v40 = vld [vmem:[%s1329_s4] ss:$0 sm:$0xff] }
  0x6b   :  { %686 = vmatpush.msra.mxu2 %v1126_v61  ;;  %723 = vmatpush.msra.mxu3 %v1052_v0  ;;  %v828_v61 = vmov 0.0  }
  0x6c   :  { %581 = vmatpush.msra.mxu0 %v1115_v53  ;;  %615 = vmatpush.msra.mxu1 %v1052_v0 }
  0x6d   :  { %690 = vmatpush.msra.mxu2 %v1137_v29  ;;  %725 = vmatpush.msra.mxu3 %v1071_v12 }
  0x6e   :  { %584 = vmatmul.f32.vlgmr.msra.gmra.mxu0 %v425_v3  ;;  %692 = vmatmul.f32.vlgmr.msra.gmra.mxu2 %v1252_v14 }
  0x6f   :  { %617 = vmatpush.msra.mxu1 %v1071_v12  ;;  %727 = vmatpush.msra.mxu3 %v1075_v13 }
  0x70   :  { %729 = vmatmul.f32.vlgmr.msra.gmra.mxu3 %v1252_v14 }
  0x71   :  { %619 = vmatpush.msra.mxu1 %v1075_v13 }
  0x72   :  { %623 = vmatmul.f32.vlgmr.msra.gmra.mxu1 %v426_v4 }
  0xc7   :  { %v88_v15 = vpop.f32.mrf.mxu0 }
  0xcb   :  { %v189_v16 = vpop.f32.mrf.mxu1  ;;  %v243_v18 = vpop.f32.mrf.mxu2 }
  0xcc   :  { %v190_v17 = vadd.f32 %v189_v16, %v88_v15 }
  0xcd   :  { %v282_v19 = vpop.f32.mrf.mxu3 }
  0xce   :  { %v244_v20 = vadd.f32 %v243_v18, %v190_v17 }
  0xd0   :  { %v283_v23 = vadd.f32 %v282_v19, %v244_v20 }
  0xd1   :  { %v351_v22 = vpop.f32.mrf.mxu0 }
  0xd2   :  { %v352_v27 = vadd.f32 %v351_v22, %v283_v23 }
  0xd3   :  { %v388_v24 = vpop.f32.mrf.mxu1 }
  0xd4   :  { %v389_v33 = vadd.f32 %v388_v24, %v352_v27 }
  0xd6   :  { %v733_v46 = vmul.f32 0.015625, %v389_v33 }
  0xd8   :  { %v735_v56 = vmul.f32 %v733_v46, %v733_v46  ;;  %v751_v30 = vsub.f32 %v1186_v36, %v733_v46  ;;  %v763_v36 = vstv %s761_s7 }
  0xe8   :  { %v430_v25 = vpop.f32.mrf.mxu2  ;;  %v531_v26 = vpop.f32.mrf.mxu3 }
  0xe9   :  { %v532_v28 = vadd.f32 %v531_v26, %v430_v25 }
  0xeb   :  { %v585_v32 = vpop.f32.mrf.mxu0 }
  0xec   :  { %v586_v39 = vadd.f32 %v585_v32, %v532_v28 }
  0xef   :  { %v624_v41 = vpop.f32.mrf.mxu1 }
  0xf0   :  { %v625_v44 = vadd.f32 %v624_v41, %v586_v39 }
  0xf1   :  { %v693_v45 = vpop.f32.mrf.mxu2 }
  0xf2   :  { %v694_v50 = vadd.f32 %v693_v45, %v625_v44 }
  0xf3   :  { %v730_v51 = vpop.f32.mrf.mxu3 }
  0xf4   :  { %v731_v52 = vadd.f32 %v730_v51, %v694_v50 }
  0xf6   :  { %v734_v57 = vmul.f32 0.015625, %v731_v52 }
  0xf8   :  { %v736_v58 = vsub.f32 %v734_v57, %v735_v56 }
  0xfa   :  { %v737_v62 = vmax.f32 %v736_v58, 0.0 }
  0xfc   :  { %v738_v0 = vadd.f32 1e-05, %v737_v62 }
  0xfe   :  { %811 = vrsqrt.f32 %v738_v0  ;;  %vm745_vm1 = vweird.f32 %v738_v0 }
 0x104   :  { %v812_v2 = vpop.eup %811 }
 0x105   :  { %v740_v7 = vmul.f32 %v812_v2, %v738_v0  ;;  %vm746_vm0 = vweird.f32 %v812_v2 }
 0x106   :  { %vm747_vm2 = vmor %vm745_vm1, %vm746_vm0 }
 0x107   :  { %v741_v8 = vmul.f32 %v812_v2, %v740_v7 }
 0x109   :  { %v742_v12 = vmul.f32 0.5, %v741_v8 }
 0x10b   :  { %v743_v13 = vsub.f32 1.5, %v742_v12 }
 0x10d   :  { %v744_v21 = vmul.f32 %v812_v2, %v743_v13 }
 0x10f   :  { %v748_v34 = vsel %vm747_vm2, %v812_v2, %v744_v21 }
 0x110   :  { %v752_v38 = vmul.f32 %v751_v30, %v748_v34 }
 0x112   :  { %v756_v42 = vmul.f32 %v809_v31, %v752_v38 }
 0x114   :  { %v760_v48 = vadd.f32 %v810_v40, %v756_v42 }
 0x116   :  { %vm769_vm3 = vcmp.gt.f32.partialorder %v760_v48, 1.0  ;;  %v771_v53 = vmul.f32 0.9, %v760_v48  ;;  %vm766_vm6 = vcmp.lt.f32.partialorder %v760_v48, %v765_v47  ;;  %vm764_vm10 = vcmp.gt.f32.partialorder %v760_v48, %v763_v36 }
 0x117   :  { %v770_v1 = vsel %vm769_vm3, 1.0, %v828_v61  ;;  %v767_v55 = vsel %vm766_vm6, -1.0, %v828_v61 }
 0x118   :  { %v772_v54 = vadd.f32 %v771_v53, %v760_v48  ;;  %v768_v4 = vsel %vm764_vm10, 1.0, %v767_v55 }
 0x11a   :  { %v773_v29 = vsub.f32 %v772_v54, %v770_v1 }
 0x11c   :  { %vm779_vm4 = vcmp.gt.f32.partialorder %v773_v29, 1.0  ;;  %v781_v35 = vmul.f32 0.9, %v773_v29  ;;  %vm775_vm5 = vcmp.lt.f32.partialorder %v773_v29, %v765_v47  ;;  %vm774_vm7 = vcmp.gt.f32.partialorder %v773_v29, %v763_v36 }
 0x11d   :  { %v780_v6 = vsel %vm779_vm4, 1.0, %v828_v61  ;;  %v776_v43 = vsel %vm775_vm5, -1.0, %v828_v61 }
 0x11e   :  { %v782_v60 = vadd.f32 %v781_v35, %v760_v48  ;;  %v777_v63 = vsel %vm774_vm7, 1.0, %v776_v43 }
 0x11f   :  { %v778_v10 = vadd.f32 %v777_v63, %v768_v4 }
 0x120   :  { %v783_v37 = vsub.f32 %v782_v60, %v780_v6 }
 0x122   :  { %vm785_vm8 = vcmp.lt.f32.partialorder %v783_v37, %v765_v47  ;;  %vm789_vm9 = vcmp.gt.f32.partialorder %v783_v37, 1.0  ;;  %v791_v49 = vmul.f32 0.9, %v783_v37  ;;  %vm784_vm11 = vcmp.gt.f32.partialorder %v783_v37, %v763_v36 }
 0x123   :  { %v786_v59 = vsel %vm785_vm8, -1.0, %v828_v61  ;;  %v790_v3 = vsel %vm789_vm9, 1.0, %v828_v61 }
 0x124   :  { %v792_v14 = vadd.f32 %v791_v49, %v760_v48  ;;  %v787_v5 = vsel %vm784_vm11, 1.0, %v786_v59 }
 0x125   :  { %v788_v11 = vadd.f32 %v787_v5, %v778_v10 }
 0x126   :  { %v793_v9 = vsub.f32 %v792_v14, %v790_v3 }
 0x128   :  { %vm794_vm12 = vcmp.gt.f32.partialorder %v793_v9, %v763_v36  ;;  %vm795_vm13 = vcmp.lt.f32.partialorder %v793_v9, %v765_v47 }
 0x129   :  { %v796_v15 = vsel %vm795_vm13, -1.0, %v828_v61 }
 0x12a   :  { %v797_v16 = vsel %vm794_vm12, 1.0, %v796_v15 }
 0x12b   :  { %v798_v17 = vadd.f32 %v797_v16, %v788_v11 }
 0x12d   :  { %v799_v18 = vmul.f32 0.25, %v798_v17 }
 0x12f   :  { %800 = vst [vmem:[%s1330_s5] sm:$0xff] %v799_v18 }
 0x130   :  { %805 = vsyncpa [#allocation3], 1 }

</bundles_post_ra>
